<compile_context>
chip_gen: v5e
topology: v5e:2x2
jax: 0.10.0
libtpu: 0.0.40
codegen_flags: <defaults>
</compile_context>

<pallas_src>
import numpy as np
import jax
import jax.numpy as jnp
from jax.experimental import pallas as pl
from jax.experimental.pallas import tpu as pltpu

_LANE = 128
_SUBLANE = 8
_MAX_LANE_MULT = 32                   # lane dim capped at 32 * 128 = 4096
_MAX_BLOCK_BYTES = 2 * 1024 * 1024    # ~2 MiB per tile


def _identity_kernel(x_ref, o_ref):
    # Abstract BaseModel.forward defines no transformation: pure passthrough.
    o_ref[...] = x_ref[...]


def _plan_slab(total: int, dtype_bytes: int):
    """Pick a lane-dense (rows, lanes) view of `total` elems plus block rows."""
    if total % _LANE != 0:
        # Awkward size: single full-extent block (lane-sparse but still legal
        # because the block equals the full array dims).
        return 1, total, 1
    units = total // _LANE
    g = 1
    for cand in range(min(units, _MAX_LANE_MULT), 0, -1):
        if units % cand == 0:
            g = cand
            break
    lanes = _LANE * g
    rows = units // g
    max_rows = max(1, _MAX_BLOCK_BYTES // (lanes * dtype_bytes))
    if rows <= max_rows:
        block_rows = rows              # full extent: always a legal block dim
    else:
        block_rows = min(512, max(_SUBLANE, (max_rows // _SUBLANE) * _SUBLANE))
    return rows, lanes, block_rows


def base_model_forward(x: jax.Array) -> jax.Array:
    """Pallas identity 'forward' for the abstract BaseModel ((N,C,H,W) passthrough)."""
    orig_shape = x.shape
    total = int(x.size)
    rows, lanes, block_rows = _plan_slab(total, x.dtype.itemsize)

    x2d = x.reshape(rows, lanes)       # metadata-only reshape of contiguous data
    grid = (pl.cdiv(rows, block_rows),)

    y2d = pl.pallas_call(
        _identity_kernel,
        out_shape=jax.ShapeDtypeStruct((rows, lanes), x.dtype),
        grid=grid,
        in_specs=[pl.BlockSpec((block_rows, lanes), lambda i: (i, 0))],
        out_specs=pl.BlockSpec((block_rows, lanes), lambda i: (i, 0)),
        input_output_aliases={0: 0},   # output reuses the input buffer
        compiler_params=pltpu.CompilerParams(
            dimension_semantics=("parallel",),
            vmem_limit_bytes=32 * 1024 * 1024,  # explicit; >= any default, < v7x physical
        ),
    )(x2d)

    return y2d.reshape(orig_shape)


# TODO(synk): set_input / optimize_parameters / data_dependent_initialize /
#             save_networks / load_networks / print_networks / set_requires_grad
#             are abstract training & IO hooks with no tensor semantics; nothing
#             to lower to Pallas.


if __name__ == "__main__":
    key = jax.random.PRNGKey(0)
    x = jax.random.normal(key, (2, 4, 16, 16), dtype=jnp.float32)

    # Snapshot to host before the call: input_output_aliases may let the runtime
    # reuse x's buffer for the output, so don't rely on x afterwards.
    x_host = np.asarray(jax.device_get(x))

    y = base_model_forward(x)
    jax.block_until_ready(y)

    assert y.shape == x.shape and y.dtype == x.dtype
    assert np.array_equal(np.asarray(jax.device_get(y)), x_host)
    print("KERNEL_OK")
</pallas_src>

<mosaic_0001>
module attributes {stable_mosaic.version = 11 : i64} {
  func.func @_identity_kernel(%arg0: i32, %arg1: memref<1x2048xf32, #tpu.memory_space<vmem>>, %arg2: memref<1x2048xf32, #tpu.memory_space<vmem>>) attributes {dimension_semantics = [#tpu.dimension_semantics<parallel>], iteration_bounds = array<i64: 1>, scalar_prefetch = 0 : i64, scratch_operands = 0 : i64, tpu.core_type = #tpu.core_type<tc>, window_params = [{transform_indices = @transform_0, window_bounds = array<i64: 1, 2048>}, {transform_indices = @transform_1, window_bounds = array<i64: 1, 2048>}]} {
    %c0 = arith.constant 0 : index
    %c0_0 = arith.constant 0 : index
    %0 = vector.load %arg1[%c0, %c0_0] : memref<1x2048xf32, #tpu.memory_space<vmem>>, vector<1x2048xf32>
    %c0_1 = arith.constant 0 : index
    %c0_2 = arith.constant 0 : index
    %1 = vector.load %arg2[%c0_1, %c0_2] : memref<1x2048xf32, #tpu.memory_space<vmem>>, vector<1x2048xf32>
    tpu.vector_store %arg2[%c0_1, %c0_2], %0 {strides = array<i32>} : memref<1x2048xf32, #tpu.memory_space<vmem>>, vector<1x2048xf32>,
    return
  }
  func.func @transform_0(%arg0: i32) -> (i32, i32) {
    %c0_i32 = arith.constant 0 : i32
    %c0_i32_0 = arith.constant 0 : i32
    return %arg0, %c0_i32 : i32, i32
  }
  func.func @transform_1(%arg0: i32) -> (i32, i32) {
    %c0_i32 = arith.constant 0 : i32
    %c0_i32_0 = arith.constant 0 : i32
    return %arg0, %c0_i32 : i32, i32
  }
}

</mosaic_0001>

<bundles_post_ra>
// kernel: tpu_custom_call.1
= control target key start
LH: loop header
LB: loop body
LE: loop exit
PB: predicated region body
PF: predicated region fallthrough
CT: control target
= control target key end

     0   :  { %6 = vsyncpa [#allocation3], 0  ;;  %s116_s0 = inlined_call_operand.hbm [shape: f32[1,2048], index: 0, kind: input, shape index: {}, may-alias: {0,1}]   ;;  %s117_s1 = inlined_call_operand.hbm [shape: f32[1,2048], index: 1, kind: output, shape index: {}, may-alias: {0,1}]  }
   0x1   :  { %7 = vsyncpa [#allocation4], 0  ;;  %s13_s8 = sshll.u32 %s116_s0, 4  ;;  %s98_s9 = smov [#allocation2]   ;;  %s14_s8 = int_to_ptr.hbm [resolvable:$true] %s13_s8 }
   0x2   :  { %s15_s10 = sshll.u32 %s98_s9, 4  ;;  %s16_s10 = int_to_ptr.vmem [resolvable:$true] %s15_s10 }
   0x3   :  { %18 = dma.hbm_to_vmem [thread:$0]  %s14_s8, 256, %s16_s10, [#allocation3]  }
   0x4   :  { %94 = dma.done.wait [#allocation3], 256  }
   0x5   :  { %95 = vsyncadd [#allocation3], 4294967040  ;;  %s99_s11 = smov [#allocation5]   ;;  %s34_s15 = sshll.u32 %s117_s1, 4  ;;  %v23_v0 = vld [vmem:[#allocation2] sm:$0xff]  ;;  %v24_v1 = vld [vmem:[#allocation2 + $0x8] sm:$0xff]  ;;  %s35_s15 = int_to_ptr.hbm [resolvable:$true] %s34_s15 }
   0x6   :  { %s32_s12 = sshll.u32 %s99_s11, 4  ;;  %25 = vst [vmem:[#allocation5] sm:$0xff] %v23_v0  ;;  %s33_s12 = int_to_ptr.vmem [resolvable:$true] %s32_s12 }
   0x7   :  { %26 = vst [vmem:[#allocation5 + $0x8] sm:$0xff] %v24_v1 }
   0x8   :  { %37 = dma.vmem_to_hbm [thread:$0]  %s33_s12, 256, %s35_s15, [#allocation4]  }
   0x9   :  { %96 = dma.done.wait [#allocation4], 256  }
   0xa   :  { %97 = vsyncadd [#allocation4], 4294967040 }
   0xb   :  { %42 = vsyncpa [#allocation3], 1 }
   0xc   :  { %43 = vsyncpa [#allocation4], 1 }

</bundles_post_ra>
